<compile_context>
chip_gen: v5e
topology: v5e:2x2
jax: 0.10.0
libtpu: 0.0.40
codegen_flags: <defaults>
</compile_context>

<pallas_src>
import jax
import jax.numpy as jnp
from jax.experimental import pallas as pl
from jax.experimental.pallas import tpu as pltpu


D_IN = 28 * 28        # 784
D_IN_PAD = 896        # 7 * 128 -> lane-aligned K dim
D_HIDDEN = 64
D_OUT = 3
D_OUT_PAD = 128       # lane-dense output store; real columns are [:, :3]
DEFAULT_TILE_B = 1024


def _round_up(n, m):
    return ((n + m - 1) // m) * m


def encoder_kernel(x_ref, w1_ref, b1_ref, w2_ref, b2_ref, o_ref):
    # Layer 1 on the MXU: bf16 operands, f32 accumulation.
    h = jnp.dot(x_ref[...], w1_ref[...], preferred_element_type=jnp.float32)
    h = jnp.maximum(h + b1_ref[...], 0.0)                      # bias + ReLU (VPU)
    # Layer 2 (tiny; padded to 128 output lanes so the store is unmasked).
    out = jnp.dot(h, w2_ref[...], preferred_element_type=jnp.float32)
    o_ref[...] = (out + b2_ref[...]).astype(o_ref.dtype)


def encoder_forward(x, w1, b1, w2, b2, *, tile_b=DEFAULT_TILE_B):
    """x: (B, 784) f32, w1: (784, 64), b1: (1, 64), w2: (64, 3), b2: (1, 3)
    -> (B, 3) f32."""
    B = x.shape[0]
    # Clamp the batch tile for small batches, keep sublane (8) alignment.
    tile_b = min(tile_b, _round_up(B, 8))
    B_pad = _round_up(B, tile_b)

    # bf16 streamed operands (zero-padded rows/lanes don't change the result).
    x_p = jnp.zeros((B_pad, D_IN_PAD), jnp.bfloat16)
    x_p = x_p.at[:B, :D_IN].set(x.astype(jnp.bfloat16))
    w1_p = jnp.zeros((D_IN_PAD, D_HIDDEN), jnp.bfloat16)
    w1_p = w1_p.at[:D_IN, :].set(w1.astype(jnp.bfloat16))
    b1_p = b1.reshape(1, D_HIDDEN).astype(jnp.float32)
    # Lane-dense second layer: pad the 3-wide output dim up to 128.
    w2_p = jnp.zeros((D_HIDDEN, D_OUT_PAD), jnp.float32).at[:, :D_OUT].set(w2)
    b2_p = jnp.zeros((1, D_OUT_PAD), jnp.float32).at[:, :D_OUT].set(
        b2.reshape(1, D_OUT))

    grid = (B_pad // tile_b,)

    cost = pl.CostEstimate(
        flops=2 * B_pad * (D_IN_PAD * D_HIDDEN + D_HIDDEN * D_OUT_PAD),
        transcendentals=0,
        bytes_accessed=(x_p.size * 2 + w1_p.size * 2 + b1_p.size * 4
                        + w2_p.size * 4 + b2_p.size * 4
                        + B_pad * D_OUT_PAD * 4),
    )

    out_pad = pl.pallas_call(
        encoder_kernel,
        out_shape=jax.ShapeDtypeStruct((B_pad, D_OUT_PAD), jnp.float32),
        grid=grid,
        in_specs=[
            pl.BlockSpec((tile_b, D_IN_PAD), lambda i: (i, 0)),   # streamed
            pl.BlockSpec((D_IN_PAD, D_HIDDEN), lambda i: (0, 0)),  # resident
            pl.BlockSpec((1, D_HIDDEN), lambda i: (0, 0)),         # resident
            pl.BlockSpec((D_HIDDEN, D_OUT_PAD), lambda i: (0, 0)), # resident
            pl.BlockSpec((1, D_OUT_PAD), lambda i: (0, 0)),        # resident
        ],
        out_specs=pl.BlockSpec((tile_b, D_OUT_PAD), lambda i: (i, 0)),
        compiler_params=pltpu.CompilerParams(
            dimension_semantics=("parallel",),   # megacore sharding on v7x
        ),
        cost_estimate=cost,
    )(x_p, w1_p, b1_p, w2_p, b2_p)

    return out_pad[:B, :D_OUT]


def init_params(key):
    """Deterministic init matching the PyTorch module's shapes.

    PyTorch stores Linear weights as (out, in); we keep them as (in, out)
    so the kernel computes x @ W directly.
    """
    k1, k2, k3, k4 = jax.random.split(key, 4)
    lim1 = 1.0 / jnp.sqrt(jnp.float32(D_IN))
    lim2 = 1.0 / jnp.sqrt(jnp.float32(D_HIDDEN))
    w1 = jax.random.uniform(k1, (D_IN, D_HIDDEN), jnp.float32, -lim1, lim1)
    b1 = jax.random.uniform(k2, (1, D_HIDDEN), jnp.float32, -lim1, lim1)
    w2 = jax.random.uniform(k3, (D_HIDDEN, D_OUT), jnp.float32, -lim2, lim2)
    b2 = jax.random.uniform(k4, (1, D_OUT), jnp.float32, -lim2, lim2)
    return w1, b1, w2, b2


def _reference(x, w1, b1, w2, b2):
    # Same bf16 quantization of the streamed operands as the kernel,
    # f32 accumulation -> tight comparison.
    x_q = x.astype(jnp.bfloat16).astype(jnp.float32)
    w1_q = w1.astype(jnp.bfloat16).astype(jnp.float32)
    return jnp.maximum(x_q @ w1_q + b1, 0.0) @ w2 + b2


if __name__ == "__main__":
    key = jax.random.PRNGKey(0)
    k_x, k_x2, k_p = jax.random.split(key, 3)
    w1, b1, w2, b2 = init_params(k_p)

    # Small batch (single grid step after clamping the tile).
    B = 8
    x = jax.random.normal(k_x, (B, D_IN), jnp.float32)
    out = jax.block_until_ready(encoder_forward(x, w1, b1, w2, b2))
    ref = _reference(x, w1, b1, w2, b2)
    assert out.shape == (B, D_OUT)
    assert jnp.allclose(out, ref, atol=1e-2, rtol=1e-2)

    # Ragged batch exercising the multi-step tiled grid + batch padding path.
    B2 = 300
    x2 = jax.random.normal(k_x2, (B2, D_IN), jnp.float32)
    out2 = jax.block_until_ready(
        encoder_forward(x2, w1, b1, w2, b2, tile_b=128))
    ref2 = _reference(x2, w1, b1, w2, b2)
    assert out2.shape == (B2, D_OUT)
    assert jnp.allclose(out2, ref2, atol=1e-2, rtol=1e-2)

    print("KERNEL_OK")
</pallas_src>

<mosaic_0001>
module attributes {stable_mosaic.version = 11 : i64} {
  func.func @encoder_kernel(%arg0: i32, %arg1: memref<8x896xbf16, #tpu.memory_space<vmem>>, %arg2: memref<896x64xbf16, #tpu.memory_space<vmem>>, %arg3: memref<1x64xf32, #tpu.memory_space<vmem>>, %arg4: memref<64x128xf32, #tpu.memory_space<vmem>>, %arg5: memref<1x128xf32, #tpu.memory_space<vmem>>, %arg6: memref<8x128xf32, #tpu.memory_space<vmem>>) attributes {dimension_semantics = [#tpu.dimension_semantics<parallel>], iteration_bounds = array<i64: 1>, scalar_prefetch = 0 : i64, scratch_operands = 0 : i64, tpu.core_type = #tpu.core_type<tc>, window_params = [{transform_indices = @transform_0, window_bounds = array<i64: 8, 896>}, {pipeline_mode = #tpu.pipeline_mode<synchronous>, transform_indices = @transform_1, window_bounds = array<i64: 896, 64>}, {pipeline_mode = #tpu.pipeline_mode<synchronous>, transform_indices = @transform_2, window_bounds = array<i64: 1, 64>}, {pipeline_mode = #tpu.pipeline_mode<synchronous>, transform_indices = @transform_3, window_bounds = array<i64: 64, 128>}, {pipeline_mode = #tpu.pipeline_mode<synchronous>, transform_indices = @transform_4, window_bounds = array<i64: 1, 128>}, {transform_indices = @transform_5, window_bounds = array<i64: 8, 128>}]} {
    %c0 = arith.constant 0 : index
    %c0_0 = arith.constant 0 : index
    %0 = vector.load %arg1[%c0, %c0_0] : memref<8x896xbf16, #tpu.memory_space<vmem>>, vector<8x896xbf16>
    %c0_1 = arith.constant 0 : index
    %c0_2 = arith.constant 0 : index
    %1 = vector.load %arg2[%c0_1, %c0_2] : memref<896x64xbf16, #tpu.memory_space<vmem>>, vector<896x64xbf16>
    %cst = arith.constant dense<0.000000e+00> : vector<8x64xf32>
    %2 = tpu.matmul %0, %1, %cst {dimension_numbers = #tpu.dot_dimension_numbers<[1], [0], [0], [1], [0, 0, 1, 1], [], []>} : vector<8x896xbf16>, vector<896x64xbf16>, vector<8x64xf32> -> vector<8x64xf32>
    %c0_3 = arith.constant 0 : index
    %c0_4 = arith.constant 0 : index
    %3 = vector.load %arg3[%c0_3, %c0_4] : memref<1x64xf32, #tpu.memory_space<vmem>>, vector<1x64xf32>
    %4 = vector.broadcast %3 : vector<1x64xf32> to vector<8x64xf32>
    %5 = arith.addf %2, %4 : vector<8x64xf32>
    %cst_5 = arith.constant 0.000000e+00 : f32
    %6 = vector.broadcast %cst_5 : f32 to vector<8x64xf32>
    %7 = arith.maximumf %5, %6 : vector<8x64xf32>
    %c0_6 = arith.constant 0 : index
    %c0_7 = arith.constant 0 : index
    %8 = vector.load %arg4[%c0_6, %c0_7] : memref<64x128xf32, #tpu.memory_space<vmem>>, vector<64x128xf32>
    %cst_8 = arith.constant dense<0.000000e+00> : vector<8x128xf32>
    %9 = tpu.matmul %7, %8, %cst_8 {dimension_numbers = #tpu.dot_dimension_numbers<[1], [0], [0], [1], [0, 0, 1, 1], [], []>} : vector<8x64xf32>, vector<64x128xf32>, vector<8x128xf32> -> vector<8x128xf32>
    %c0_9 = arith.constant 0 : index
    %c0_10 = arith.constant 0 : index
    %10 = vector.load %arg5[%c0_9, %c0_10] : memref<1x128xf32, #tpu.memory_space<vmem>>, vector<1x128xf32>
    %11 = vector.broadcast %10 : vector<1x128xf32> to vector<8x128xf32>
    %12 = arith.addf %9, %11 : vector<8x128xf32>
    %c0_11 = arith.constant 0 : index
    %c0_12 = arith.constant 0 : index
    %13 = vector.load %arg6[%c0_11, %c0_12] : memref<8x128xf32, #tpu.memory_space<vmem>>, vector<8x128xf32>
    tpu.vector_store %arg6[%c0_11, %c0_12], %12 {strides = array<i32>} : memref<8x128xf32, #tpu.memory_space<vmem>>, vector<8x128xf32>,
    return
  }
  func.func @transform_0(%arg0: i32) -> (i32, i32) {
    %c0_i32 = arith.constant 0 : i32
    %c0_i32_0 = arith.constant 0 : i32
    return %arg0, %c0_i32 : i32, i32
  }
  func.func @transform_1(%arg0: i32) -> (i32, i32) {
    %c0_i32 = arith.constant 0 : i32
    %c0_i32_0 = arith.constant 0 : i32
    %c0_i32_1 = arith.constant 0 : i32
    return %c0_i32, %c0_i32_0 : i32, i32
  }
  func.func @transform_2(%arg0: i32) -> (i32, i32) {
    %c0_i32 = arith.constant 0 : i32
    %c0_i32_0 = arith.constant 0 : i32
    %c0_i32_1 = arith.constant 0 : i32
    return %c0_i32, %c0_i32_0 : i32, i32
  }
  func.func @transform_3(%arg0: i32) -> (i32, i32) {
    %c0_i32 = arith.constant 0 : i32
    %c0_i32_0 = arith.constant 0 : i32
    %c0_i32_1 = arith.constant 0 : i32
    return %c0_i32, %c0_i32_0 : i32, i32
  }
  func.func @transform_4(%arg0: i32) -> (i32, i32) {
    %c0_i32 = arith.constant 0 : i32
    %c0_i32_0 = arith.constant 0 : i32
    %c0_i32_1 = arith.constant 0 : i32
    return %c0_i32, %c0_i32_0 : i32, i32
  }
  func.func @transform_5(%arg0: i32) -> (i32, i32) {
    %c0_i32 = arith.constant 0 : i32
    %c0_i32_0 = arith.constant 0 : i32
    return %arg0, %c0_i32 : i32, i32
  }
}

</mosaic_0001>

<bundles_post_ra>
// kernel: tpu_custom_call.1
= control target key start
LH: loop header
LB: loop body
LE: loop exit
PB: predicated region body
PF: predicated region fallthrough
CT: control target
= control target key end

     0   :  { %s1201_s0 = inlined_call_operand.vmem [shape: bf16[8,896], index: 0, kind: input, shape index: {}]   ;;  %s1202_s1 = inlined_call_operand.vmem [shape: bf16[896,64], index: 1, kind: input, shape index: {}]   ;;  %s1203_s2 = inlined_call_operand.vmem [shape: f32[1,64], index: 2, kind: input, shape index: {}]   ;;  %s1204_s3 = inlined_call_operand.vmem [shape: f32[64,128], index: 3, kind: input, shape index: {}]   ;;  %s1205_s4 = inlined_call_operand.vmem [shape: f32[1,128], index: 4, kind: input, shape index: {}]   ;;  %s1206_s5 = inlined_call_operand.hbm [shape: f32[8,128], index: 5, kind: output, shape index: {}]  }
   0x1   :  { %v879_v0 = vld [vmem:[%s1202_s1 + $0x38] sm:$0xff]  ;;  %v878_v3 = vld [vmem:[%s1202_s1 + $0x30] sm:$0xff]  ;;  %v877_v7 = vld [vmem:[%s1202_s1 + $0x28] sm:$0xff] }
   0x2   :  { %v887_v1 = vld [vmem:[%s1202_s1 + $0x78] sm:$0xff]  ;;  %502 = vmatpush.bf16.msra.mxu0 %v879_v0  ;;  %v886_v4 = vld [vmem:[%s1202_s1 + $0x70] sm:$0xff]  ;;  %v885_v8 = vld [vmem:[%s1202_s1 + $0x68] sm:$0xff] }
   0x3   :  { %v895_v2 = vld [vmem:[%s1202_s1 + $0xb8] sm:$0xff]  ;;  %515 = vmatpush.bf16.msra.mxu1 %v887_v1  ;;  %v894_v5 = vld [vmem:[%s1202_s1 + $0xb0] sm:$0xff]  ;;  %v893_v9 = vld [vmem:[%s1202_s1 + $0xa8] sm:$0xff] }
   0x4   :  { %528 = vmatpush.bf16.msra.mxu2 %v895_v2  ;;  %v903_v6 = vld [vmem:[%s1202_s1 + $0xf8] sm:$0xff]  ;;  %v902_v10 = vld [vmem:[%s1202_s1 + $0xf0] sm:$0xff]  ;;  %v876_v11 = vld [vmem:[%s1202_s1 + $0x20] sm:$0xff] }
   0x5   :  { %541 = vmatpush.bf16.msra.mxu3 %v903_v6  ;;  %v884_v12 = vld [vmem:[%s1202_s1 + $0x60] sm:$0xff]  ;;  %v901_v14 = vld [vmem:[%s1202_s1 + $0xe8] sm:$0xff]  ;;  %v875_v15 = vld [vmem:[%s1202_s1 + $0x18] sm:$0xff] }
   0x6   :  { %503 = vmatpush.bf16.msra.mxu0 %v878_v3  ;;  %v892_v13 = vld [vmem:[%s1202_s1 + $0xa0] sm:$0xff]  ;;  %v883_v16 = vld [vmem:[%s1202_s1 + $0x58] sm:$0xff] }
   0x7   :  { %516 = vmatpush.bf16.msra.mxu1 %v886_v4  ;;  %v891_v17 = vld [vmem:[%s1202_s1 + $0x98] sm:$0xff]  ;;  %v900_v18 = vld [vmem:[%s1202_s1 + $0xe0] sm:$0xff] }
   0x8   :  { %529 = vmatpush.bf16.msra.mxu2 %v894_v5 }
   0x9   :  { %542 = vmatpush.bf16.msra.mxu3 %v902_v10 }
   0xa   :  { %504 = vmatpush.bf16.msra.mxu0 %v877_v7 }
   0xb   :  { %517 = vmatpush.bf16.msra.mxu1 %v885_v8 }
   0xc   :  { %530 = vmatpush.bf16.msra.mxu2 %v893_v9 }
   0xd   :  { %543 = vmatpush.bf16.msra.mxu3 %v901_v14 }
   0xe   :  { %505 = vmatpush.bf16.msra.mxu0 %v876_v11 }
   0xf   :  { %518 = vmatpush.bf16.msra.mxu1 %v884_v12 }
  0x10   :  { %531 = vmatpush.bf16.msra.mxu2 %v892_v13 }
  0x11   :  { %10 = vsyncpa [#allocation3], 0  ;;  %v874_v19 = vld [vmem:[%s1202_s1 + $0x10] sm:$0xff]  ;;  %544 = vmatpush.bf16.msra.mxu3 %v900_v18  ;;  %v899_v22 = vld [vmem:[%s1202_s1 + $0xd8] sm:$0xff]  ;;  %vm606_vm0 = vcmask 523264   ;;  %s957_s29 = smov [#allocation2]  }
  0x12   :  { %506 = vmatpush.bf16.msra.mxu0 %v875_v15  ;;  %v882_v20 = vld [vmem:[%s1202_s1 + $0x50] sm:$0xff]  ;;  %v873_v23 = vld [vmem:[%s1202_s1 + $0x8] sm:$0xff]  ;;  %v21_v25 = vld [vmem:[%s1201_s0] sm:$0xff]  ;;  %s636_s30 = sshll.u32 %s957_s29, 4  ;;  %s638_s8 = sshll.u32 %s1206_s5, 4  ;;  %s637_s30 = int_to_ptr.vmem [resolvable:$true] %s636_s30  ;;  %s639_s8 = int_to_ptr.hbm [resolvable:$true] %s638_s8 }
  0x13   :  { %519 = vmatpush.bf16.msra.mxu1 %v883_v16  ;;  %v890_v21 = vld [vmem:[%s1202_s1 + $0x90] sm:$0xff]  ;;  %v881_v24 = vld [vmem:[%s1202_s1 + $0x48] sm:$0xff]  ;;  %v145_v29 = vunpack.c.l.b16 %v21_v25  ;;  %v872_v30 = vld [vmem:[%s1202_s1] sm:$0xff]  ;;  %v146_v33 = vunpack.c.h.b16 %v21_v25 }
  0x14   :  { %532 = vmatpush.bf16.msra.mxu2 %v891_v17  ;;  %v889_v26 = vld [vmem:[%s1202_s1 + $0x88] sm:$0xff]  ;;  %v898_v27 = vld [vmem:[%s1202_s1 + $0xd0] sm:$0xff]  ;;  %v880_v31 = vld [vmem:[%s1202_s1 + $0x40] sm:$0xff] }
  0x15   :  { %545 = vmatpush.bf16.msra.mxu3 %v899_v22  ;;  %v22_v28 = vld [vmem:[%s1201_s0 + $0x8] sm:$0xff]  ;;  %v888_v34 = vld [vmem:[%s1202_s1 + $0x80] sm:$0xff]  ;;  %v911_v35 = vld [vmem:[%s1202_s1 + $0x138] sm:$0xff]  ;;  %v152_v38 = vpack.c.b16 %v145_v29, %v145_v29  ;;  %v153_v41 = vpack.c.b16 %v146_v33, %v146_v33 }
  0x16   :  { %507 = vmatpush.bf16.msra.mxu0 %v874_v19  ;;  %v147_v32 = vunpack.c.l.b16 %v22_v28  ;;  %v919_v36 = vld [vmem:[%s1202_s1 + $0x178] sm:$0xff]  ;;  %v897_v39 = vld [vmem:[%s1202_s1 + $0xc8] sm:$0xff]  ;;  %v910_v42 = vld [vmem:[%s1202_s1 + $0x130] sm:$0xff]  ;;  %v148_v46 = vunpack.c.h.b16 %v22_v28 }
  0x17   :  { %520 = vmatpush.bf16.msra.mxu1 %v882_v20  ;;  %v927_v37 = vld [vmem:[%s1202_s1 + $0x1b8] sm:$0xff]  ;;  %v918_v43 = vld [vmem:[%s1202_s1 + $0x170] sm:$0xff]  ;;  %v896_v45 = vld [vmem:[%s1202_s1 + $0xc0] sm:$0xff] }
  0x18   :  { %533 = vmatpush.bf16.msra.mxu2 %v890_v21  ;;  %v154_v40 = vpack.c.b16 %v147_v32, %v147_v32  ;;  %v926_v44 = vld [vmem:[%s1202_s1 + $0x1b0] sm:$0xff]  ;;  %v909_v47 = vld [vmem:[%s1202_s1 + $0x128] sm:$0xff]  ;;  %v155_v50 = vpack.c.b16 %v148_v46, %v148_v46  ;;  %v908_v51 = vld [vmem:[%s1202_s1 + $0x120] sm:$0xff] }
  0x19   :  { %546 = vmatpush.bf16.msra.mxu3 %v898_v27  ;;  %v917_v48 = vld [vmem:[%s1202_s1 + $0x168] sm:$0xff]  ;;  %v916_v52 = vld [vmem:[%s1202_s1 + $0x160] sm:$0xff]  ;;  %v907_v54 = vld [vmem:[%s1202_s1 + $0x118] sm:$0xff] }
  0x1a   :  { %508 = vmatpush.bf16.msra.mxu0 %v873_v23  ;;  %v925_v49 = vld [vmem:[%s1202_s1 + $0x1a8] sm:$0xff]  ;;  %v924_v53 = vld [vmem:[%s1202_s1 + $0x1a0] sm:$0xff]  ;;  %v915_v55 = vld [vmem:[%s1202_s1 + $0x158] sm:$0xff] }
  0x1b   :  { %521 = vmatpush.bf16.msra.mxu1 %v881_v24  ;;  %v923_v56 = vld [vmem:[%s1202_s1 + $0x198] sm:$0xff]  ;;  %v906_v57 = vld [vmem:[%s1202_s1 + $0x110] sm:$0xff]  ;;  %v905_v60 = vld [vmem:[%s1202_s1 + $0x108] sm:$0xff] }
  0x1c   :  { %534 = vmatpush.bf16.msra.mxu2 %v889_v26  ;;  %v914_v58 = vld [vmem:[%s1202_s1 + $0x150] sm:$0xff]  ;;  %v913_v62 = vld [vmem:[%s1202_s1 + $0x148] sm:$0xff]  ;;  %v24_v0 = vld [vmem:[%s1201_s0 + $0x18] sm:$0xf] }
  0x1d   :  { %547 = vmatpush.bf16.msra.mxu3 %v897_v39  ;;  %v922_v59 = vld [vmem:[%s1202_s1 + $0x190] sm:$0xff]  ;;  %v921_v63 = vld [vmem:[%s1202_s1 + $0x188] sm:$0xff]  ;;  %v904_v2 = vld [vmem:[%s1202_s1 + $0x100] sm:$0xff]  ;;  %v151_v4 = vunpack.c.l.b16 %v24_v0 }
  0x1e   :  { %509 = vmatpush.bf16.msra.mxu0 %v872_v30  ;;  %v23_v61 = vld [vmem:[%s1201_s0 + $0x10] sm:$0xff]  ;;  %v912_v5 = vld [vmem:[%s1202_s1 + $0x140] sm:$0xff]  ;;  %v601_v10 = vld [vmem:[%s1204_s3 + $0x38] sm:$0xff] }
  0x1f   :  { %522 = vmatpush.bf16.msra.mxu1 %v880_v31  ;;  %v149_v1 = vunpack.c.l.b16 %v23_v61  ;;  %v150_v3 = vunpack.c.h.b16 %v23_v61  ;;  %v920_v6 = vld [vmem:[%s1202_s1 + $0x180] sm:$0xff]  ;;  %v158_v9 = vpack.c.b16 %v151_v4, %v151_v4  ;;  %v600_v11 = vld [vmem:[%s1204_s3 + $0x30] sm:$0xff]  ;;  %v599_v12 = vld [vmem:[%s1204_s3 + $0x28] sm:$0xff] }
  0x20   :  { %535 = vmatpush.bf16.msra.mxu2 %v888_v34  ;;  %v598_v13 = vld [vmem:[%s1204_s3 + $0x20] sm:$0xff]  ;;  %v597_v15 = vld [vmem:[%s1204_s3 + $0x18] sm:$0xff]  ;;  %v596_v17 = vld [vmem:[%s1204_s3 + $0x10] sm:$0xff] }
  0x21   :  { %510 = vmatmul.bf16.vlgmr.msra.gmra.mxu0 %v152_v38  ;;  %548 = vmatpush.bf16.msra.mxu3 %v896_v45  ;;  %v156_v7 = vpack.c.b16 %v149_v1, %v149_v1  ;;  %v157_v8 = vpack.c.b16 %v150_v3, %v150_v3  ;;  %v595_v18 = vld [vmem:[%s1204_s3 + $0x8] sm:$0xff]  ;;  %v594_v20 = vld [vmem:[%s1204_s3] sm:$0xff] }
  0x22   :  { %554 = vmatpush.bf16.msrb.mxu0 %v911_v35  ;;  %523 = vmatmul.bf16.vlgmr.msra.gmra.mxu1 %v153_v41  ;;  %v929_v23 = vld [vmem:[%s1203_s2] ss:$0 sm:$0xff] }
  0x23   :  { %567 = vmatpush.bf16.msrb.mxu1 %v919_v36  ;;  %536 = vmatmul.bf16.vlgmr.msra.gmra.mxu2 %v154_v40  ;;  %v930_v41 = vld [vmem:[%s1205_s4] ss:$0 sm:$0xff] }
  0x24   :  { %580 = vmatpush.bf16.msrb.mxu2 %v927_v37  ;;  %549 = vmatmul.bf16.vlgmr.msra.gmra.mxu3 %v155_v50 }
  0x25   :  { %618 = vmatpush.msrb.mxu3 %v601_v10 }
  0x26   :  { %555 = vmatpush.bf16.msrb.mxu0 %v910_v42 }
  0x27   :  { %568 = vmatpush.bf16.msrb.mxu1 %v918_v43  ;;  %619 = vmatpush.msrb.mxu3 %v600_v11 }
  0x28   :  { %581 = vmatpush.bf16.msrb.mxu2 %v926_v44 }
  0x29   :  { %620 = vmatpush.msrb.mxu3 %v599_v12 }
  0x2a   :  { %556 = vmatpush.bf16.msrb.mxu0 %v909_v47 }
  0x2b   :  { %569 = vmatpush.bf16.msrb.mxu1 %v917_v48  ;;  %621 = vmatpush.msrb.mxu3 %v598_v13 }
  0x2c   :  { %582 = vmatpush.bf16.msrb.mxu2 %v925_v49 }
  0x2d   :  { %622 = vmatpush.msrb.mxu3 %v597_v15 }
  0x2e   :  { %557 = vmatpush.bf16.msrb.mxu0 %v908_v51 }
  0x2f   :  { %570 = vmatpush.bf16.msrb.mxu1 %v916_v52  ;;  %623 = vmatpush.msrb.mxu3 %v596_v17 }
  0x30   :  { %583 = vmatpush.bf16.msrb.mxu2 %v924_v53 }
  0x31   :  { %624 = vmatpush.msrb.mxu3 %v595_v18 }
  0x32   :  { %558 = vmatpush.bf16.msrb.mxu0 %v907_v54 }
  0x33   :  { %571 = vmatpush.bf16.msrb.mxu1 %v915_v55  ;;  %625 = vmatpush.msrb.mxu3 %v594_v20 }
  0x34   :  { %584 = vmatpush.bf16.msrb.mxu2 %v923_v56 }
  0x36   :  { %559 = vmatpush.bf16.msrb.mxu0 %v906_v57 }
  0x37   :  { %572 = vmatpush.bf16.msrb.mxu1 %v914_v58 }
  0x38   :  { %585 = vmatpush.bf16.msrb.mxu2 %v922_v59 }
  0x3a   :  { %560 = vmatpush.bf16.msrb.mxu0 %v905_v60 }
  0x3b   :  { %573 = vmatpush.bf16.msrb.mxu1 %v913_v62 }
  0x3c   :  { %586 = vmatpush.bf16.msrb.mxu2 %v921_v63 }
  0x3e   :  { %561 = vmatpush.bf16.msrb.mxu0 %v904_v2 }
  0x3f   :  { %574 = vmatpush.bf16.msrb.mxu1 %v912_v5 }
  0x40   :  { %587 = vmatpush.bf16.msrb.mxu2 %v920_v6 }
  0x41   :  { %562 = vmatmul.bf16.vlgmr.msrb.gmra.mxu0 %v156_v7 }
  0x42   :  { %575 = vmatmul.bf16.vlgmr.msrb.gmra.mxu1 %v157_v8 }
  0x43   :  { %588 = vmatmul.bf16.vlgmr.msrb.gmra.mxu2 %v158_v9 }
  0x9e   :  { %v511_v14 = vpop.f32.mrf.mxu0 }
  0x9f   :  { %v524_v16 = vpop.f32.mrf.mxu1  ;;  %v512_v26 = vadd.f32 %v929_v23, %v511_v14 }
  0xa1   :  { %v525_v27 = vadd.f32 %v524_v16, %v512_v26 }
  0xa6   :  { %v537_v19 = vpop.f32.mrf.mxu2  ;;  %v513_v21 = vpop.f32.mrf.mxu0 }
  0xa7   :  { %v526_v22 = vpop.f32.mrf.mxu1  ;;  %v550_v24 = vpop.f32.mrf.mxu3  ;;  %v538_v29 = vadd.f32 %v537_v19, %v525_v27 }
  0xa9   :  { %v551_v30 = vadd.f32 %v550_v24, %v538_v29 }
  0xae   :  { %v539_v25 = vpop.f32.mrf.mxu2 }
  0xaf   :  { %v552_v28 = vpop.f32.mrf.mxu3 }
  0xbe   :  { %v563_v31 = vpop.f32.mrf.mxu0 }
  0xbf   :  { %v576_v32 = vpop.f32.mrf.mxu1  ;;  %v564_v33 = vadd.f32 %v563_v31, %v551_v30 }
  0xc1   :  { %v577_v34 = vadd.f32 %v576_v32, %v564_v33 }
  0xc6   :  { %v589_v35 = vpop.f32.mrf.mxu2  ;;  %v565_v37 = vpop.f32.mrf.mxu0 }
  0xc7   :  { %v590_v36 = vadd.f32 %v589_v35, %v577_v34  ;;  %v578_v38 = vpop.f32.mrf.mxu1 }
  0xc9   :  { %v593_v39 = vmax.f32 %v590_v36, 0.0 }
  0xcb   :  { %871 = vmatmul.msk.f32.vlgmr.msrb.gmra.mxu3 %vm606_vm0, %v593_v39 }
  0xce   :  { %v591_v40 = vpop.f32.mrf.mxu2 }
 0x14e   :  { %v627_v42 = vpop.f32.mrf.mxu3 }
 0x14f   :  { %v628_v43 = vadd.f32 %v930_v41, %v627_v42 }
 0x151   :  { %630 = vst [vmem:[#allocation2] sm:$0xff] %v628_v43 }
 0x152   :  { %641 = dma.vmem_to_hbm [thread:$0]  %s637_s30, 128, %s639_s8, [#allocation3]  }
 0x153   :  { %955 = dma.done.wait [#allocation3], 128  }
 0x154   :  { %956 = vsyncadd [#allocation3], 4294967168 }
 0x155   :  { %646 = vsyncpa [#allocation3], 1 }

</bundles_post_ra>
